<compile_context>
chip_gen: v6e
topology: v6e:2x2x1
jax: 0.10.0
libtpu: 0.0.40
codegen_flags: <defaults>
</compile_context>

<pallas_src>
import jax
import jax.numpy as jnp
from jax.experimental import pallas as pl
from jax.experimental.pallas import tpu as pltpu


def _identity_dma_kernel(x_hbm_ref, o_hbm_ref, copy_sem):
    # Single whole-array HBM -> HBM DMA.  The DMA engine streams the contiguous
    # buffer at HBM bandwidth; no vld/vst body, no pipeline fill/drain.
    cp = pltpu.make_async_copy(x_hbm_ref, o_hbm_ref, copy_sem)
    cp.start()
    cp.wait()


def pallas_identity_copy(x: jax.Array) -> jax.Array:
    """Identity that materializes a new output buffer via a Pallas HBM->HBM DMA.

    Only needed when a distinct output buffer is required; otherwise use
    `pallas_pass` (returns x, zero traffic).
    """
    if x.size == 0:
        return x  # nothing to copy
    return pl.pallas_call(
        _identity_dma_kernel,
        out_shape=jax.ShapeDtypeStruct(x.shape, x.dtype),
        in_specs=[pl.BlockSpec(memory_space=pl.ANY)],
        out_specs=pl.BlockSpec(memory_space=pl.ANY),
        scratch_shapes=[pltpu.SemaphoreType.DMA],
    )(x)


def pallas_pass(x: jax.Array) -> jax.Array:
    """Pass.forward(x): the identity.

    Top perf recommendation: do not copy at all -- an Identity op needs zero
    data movement, so we just return x.
    """
    return x


if __name__ == "__main__":
    key = jax.random.PRNGKey(0)

    # Shape consistent with a small conv-net activation (NCHW).
    x = jax.random.normal(key, (2, 4, 16, 16), dtype=jnp.float32)

    # True forward semantics of Pass: return x (zero HBM traffic).
    y = pallas_pass(x)
    jax.block_until_ready(y)
    assert y.shape == x.shape and y.dtype == x.dtype
    assert bool(jnp.array_equal(y, x))

    # Pallas HBM->HBM DMA copy path (when a materialized buffer is required).
    yc = pallas_identity_copy(x)
    jax.block_until_ready(yc)
    assert yc.shape == x.shape and yc.dtype == x.dtype
    assert bool(jnp.array_equal(yc, x))

    # bf16 input: same path, no dtype-specific tiling needed.
    xb = x.astype(jnp.bfloat16)
    yb = pallas_identity_copy(xb)
    jax.block_until_ready(yb)
    assert yb.shape == xb.shape and yb.dtype == xb.dtype
    assert bool(jnp.array_equal(yb, xb))

    # Awkward, non-(8,128)-aligned shape: no pad / slice fallback anymore.
    xu = jax.random.normal(jax.random.PRNGKey(0), (3, 5, 7), dtype=jnp.float32)
    yu = pallas_identity_copy(xu)
    jax.block_until_ready(yu)
    assert yu.shape == xu.shape and yu.dtype == xu.dtype
    assert bool(jnp.array_equal(yu, xu))

    print("KERNEL_OK")
</pallas_src>

<mosaic_0001>
module attributes {stable_mosaic.version = 11 : i64} {
  func.func @_identity_dma_kernel(%arg0: memref<2x4x16x16xf32, #tpu.memory_space<any>>, %arg1: memref<2x4x16x16xf32, #tpu.memory_space<any>>, %arg2: memref<!tpu.dma_semaphore, #tpu.memory_space<semaphore_mem>>) attributes {dimension_semantics = [], scalar_prefetch = 0 : i64, scratch_operands = 1 : i64, tpu.core_type = #tpu.core_type<tc>} {
    tpu.enqueue_dma source(%arg0 : memref<2x4x16x16xf32, #tpu.memory_space<any>>) target(%arg1 : memref<2x4x16x16xf32, #tpu.memory_space<any>>) target_semaphore(%arg2 : memref<!tpu.dma_semaphore, #tpu.memory_space<semaphore_mem>>)
    tpu.wait_dma2 semaphore(%arg2 : memref<!tpu.dma_semaphore, #tpu.memory_space<semaphore_mem>>) src(%arg0 : memref<2x4x16x16xf32, #tpu.memory_space<any>>) dst(%arg1 : memref<2x4x16x16xf32, #tpu.memory_space<any>>)
    return
  }
}

</mosaic_0001>

<bundles_post_ra>
// kernel: tpu_custom_call.1
= control target key start
LH: loop header
LB: loop body
LE: loop exit
PB: predicated region body
PF: predicated region fallthrough
CT: control target
= control target key end

     0   :  { %s30_s6 = smov [#allocation2]   ;;  %s31_s7 = smov 131072   ;;  %s49_s0 = inlined_call_operand.hbm [shape: f32[2,4,16,16], index: 0, kind: input, shape index: {}]   ;;  %s50_s1 = inlined_call_operand.hbm [shape: f32[2,4,16,16], index: 1, kind: output, shape index: {}]  }
   0x1   :  { %s32_s8 = smov 0  }
   0x2   :  { %12 = dma.general %s49_s0, 2048, %s50_s1, %s30_s6, %s31_s7, [#allocation4], %s32_s8, 0  }
   0x3   :  { %28 = dma.done.wait [#allocation2], 2048 }
   0x4   :  { %29 = vsyncadd [#allocation2], 4294965248 }
   0x5   :  { %18 = vsyncmov [#allocation2] }
   0x8   :  { %s19_s13 = vpop.sfrf %18 }
   0x9   :  { %p24_p0 = scmp.ne.s32.totalorder %s19_s13, 0 }
   0xb   :  { %23 = shalt.err (%p24_p0)  }

</bundles_post_ra>
